<compile_context>
chip_gen: v6e
topology: v6e:2x2x1
jax: 0.10.0
libtpu: 0.0.40
codegen_flags: <defaults>
</compile_context>

<pallas_src>
import functools

import jax
import jax.numpy as jnp
from jax.experimental import pallas as pl
from jax.experimental.pallas import tpu as pltpu


# ----------------------------- Pallas kernel ------------------------------ #
def _encoder_kernel(x_ref, b1_ref, t1_ref, b2_ref, t2_ref, o_ref, h1_ref, *, M):
    """Fused Conv+BN+ReLU x2 for one grid step of B images (M = B*(H+2) rows).

    x_ref : [1, 3, M, (W+4)*Cin]     pre-shifted padded input (kh on dim 1)
    b1_ref: [3, (W+4)*Cin, (W+2)*C1] banded conv-1 weights, BN scale folded in
    t1_ref: [M, (W+2)*C1]            BN shift; 1-pixel ring = -1e30 (relu -> 0)
    b2_ref: [3, (W+2)*C1, W*C2]      banded conv-2 weights, BN scale folded in
    t2_ref: [1, W*C2]                BN shift, tiled over width
    o_ref : [1, M, W*C2]             lane-dense output on the padded row grid
    h1_ref: [M+2, (W+2)*C1]          VMEM scratch: ring-zeroed block-1 act
                                     (+2 tail rows keep the kh=1,2 slices in
                                     bounds; they only feed discarded rows)
    """
    # ---- block 1: Conv(Cin->C1)*bn_scale + bn_shift, ReLU -------------------
    acc1 = jnp.dot(x_ref[0, 0], b1_ref[0], preferred_element_type=jnp.float32)
    for kh in (1, 2):
        acc1 = acc1 + jnp.dot(x_ref[0, kh], b1_ref[kh],
                              preferred_element_type=jnp.float32)
    # Ring rows/cols of the shift are -1e30 -> relu gives exactly 0.0 there,
    # which is precisely the zero padding block 2 needs.  Activation stays in
    # VMEM; no iota mask, no scale multiply.
    h1_ref[0:M, :] = jnp.maximum(acc1 + t1_ref[...], 0.0)
    h1_ref[M:M + 2, :] = jnp.zeros((2, h1_ref.shape[1]), jnp.float32)

    # ---- block 2: Conv(C1->C2)*bn_scale + bn_shift, ReLU --------------------
    acc2 = jnp.dot(h1_ref[0:M, :], b2_ref[0],
                   preferred_element_type=jnp.float32)
    for kh in (1, 2):
        acc2 = acc2 + jnp.dot(h1_ref[kh:kh + M, :], b2_ref[kh],
                              preferred_element_type=jnp.float32)
    o_ref[0] = jnp.maximum(acc2 + t2_ref[...], 0.0)


def fused_encoder(xop, b1, t1_2d, b2, t2, *, M):
    G = xop.shape[0]
    L1 = b2.shape[1]          # (W+2)*C1
    L2 = b2.shape[2]          # W*C2
    kernel = functools.partial(_encoder_kernel, M=M)
    return pl.pallas_call(
        kernel,
        out_shape=jax.ShapeDtypeStruct((G, M, L2), jnp.float32),
        grid_spec=pltpu.PrefetchScalarGridSpec(
            num_scalar_prefetch=0,
            grid=(G,),
            in_specs=[
                pl.BlockSpec((1,) + xop.shape[1:], lambda g: (g, 0, 0, 0)),
                # grid-invariant operands: constant block index -> fetched once
                pl.BlockSpec(b1.shape, lambda g: (0, 0, 0)),
                pl.BlockSpec(t1_2d.shape, lambda g: (0, 0)),
                pl.BlockSpec(b2.shape, lambda g: (0, 0, 0)),
                pl.BlockSpec(t2.shape, lambda g: (0, 0)),
            ],
            out_specs=pl.BlockSpec((1, M, L2), lambda g: (g, 0, 0)),
            scratch_shapes=[pltpu.VMEM((M + 2, L1), jnp.float32)],
        ),
        compiler_params=pltpu.CompilerParams(
            dimension_semantics=("parallel",)),
    )(xop, b1, t1_2d, b2, t2)


# ------------------------- one-time weight prep ---------------------------- #
def _banded_weight(w_s, win, wout):
    """w_s: [3(kh), 3(kw), Cin, Cout] -> [3, win*Cin, wout*Cout] with
    B[kh][b*Cin+c, j*Cout+o] = sum_kw [b == j+kw] * w_s[kh, kw, c, o].
    Built elementwise (no dot) so the weights stay exact f32."""
    kh3, kw3, cin, cout = w_s.shape
    b = jnp.arange(win)[None, :, None]
    j = jnp.arange(wout)[None, None, :]
    kw = jnp.arange(kw3)[:, None, None]
    mask = (b == j + kw).astype(w_s.dtype)                    # [3, win, wout]
    band = (mask[None, :, :, :, None, None]                   # [1,kw,win,wout,1,1]
            * w_s[:, :, None, None, :, :])                    # [kh,kw,1,1,cin,cout]
    band = band.sum(axis=1)                                   # [kh,win,wout,cin,cout]
    band = jnp.transpose(band, (0, 1, 3, 2, 4))               # [kh,win,cin,wout,cout]
    return band.reshape(kh3, win * cin, wout * cout)


def prepare_encoder_operands(params, *, H, W, batch_block, eps=1e-5):
    """Hoisted out of the per-call forward path; run once at param-load time."""
    C1 = params["w1"].shape[0]
    Hp = H + 2

    def fold(bn):
        bias, gamma, beta, mean, var = bn
        inv = gamma / jnp.sqrt(var + eps)
        return inv, beta + (bias - mean) * inv

    inv1, t1 = fold(params["bn1"])
    inv2, t2 = fold(params["bn2"])

    # OIHW -> HWIO, with the BN scale folded into the output channels.
    w1_s = jnp.transpose(params["w1"], (2, 3, 1, 0)) * inv1[None, None, None, :]
    w2_s = jnp.transpose(params["w2"], (2, 3, 1, 0)) * inv2[None, None, None, :]
    b1c = _banded_weight(w1_s, W + 4, W + 2)        # [3, (W+4)*Cin, (W+2)*C1]
    b2c = _banded_weight(w2_s, W + 2, W)            # [3, (W+2)*C1, W*C2]

    # Block-1 additive shift on the padded (H+2)x(W+2) grid, tiled over the
    # batch block.  The 1-pixel ring is -1e30 so relu(acc + shift) == 0.0
    # there exactly (acc is finite and tiny), i.e. block-2's zero padding
    # costs zero in-kernel VPU ops.
    t1_img = jnp.broadcast_to(jnp.tile(t1, W + 2), (Hp, (W + 2) * C1))
    col = jnp.arange((W + 2) * C1) // C1
    row = jnp.arange(Hp)
    ring = ((row[:, None] == 0) | (row[:, None] == Hp - 1)
            | (col[None, :] == 0) | (col[None, :] == W + 1))
    t1_img = jnp.where(ring, jnp.float32(-1e30), t1_img)
    t1_2d = jnp.tile(t1_img, (batch_block, 1))       # [B*(H+2), (W+2)*C1]

    t2_row = jnp.tile(t2, W).reshape(1, W * params["w2"].shape[0])
    return {"b1": b1c, "t1": t1_2d, "b2": b2c, "t2": t2_row}


# ------------------------------- forward ------------------------------------ #
@functools.partial(jax.jit, static_argnames=("block_b",))
def base_encoder_forward(x_nchw, prep, *, block_b):
    """BaseEncoder.forward: output = self.model(inputs).  NCHW in / NCHW out."""
    x = jnp.transpose(x_nchw, (0, 2, 3, 1))             # NCHW -> NHWC
    N, H, W, Cin = x.shape
    Hp = H + 2
    C2 = prep["t2"].shape[1] // W
    assert N % block_b == 0
    G = N // block_b

    # pad by 2: block 1 is evaluated on the (H+2)x(W+2) padded grid so its
    # (zeroed) ring doubles as block-2's zero padding.  kh is pre-shifted onto
    # a leading dim so the kernel never slices the input at sublane offsets.
    xpad = jnp.pad(x, ((0, 0), (2, 2), (2, 2), (0, 0)))
    x2 = xpad.reshape(N, H + 4, (W + 4) * Cin)
    xsh = jnp.stack([x2[:, kh:kh + Hp, :] for kh in range(3)], axis=1)
    xop = xsh.reshape(G, block_b, 3, Hp, (W + 4) * Cin)
    xop = jnp.transpose(xop, (0, 2, 1, 3, 4)).reshape(
        G, 3, block_b * Hp, (W + 4) * Cin)

    out = fused_encoder(xop, prep["b1"], prep["t1"], prep["b2"], prep["t2"],
                        M=block_b * Hp)                  # [G, B*(H+2), W*C2]
    out = out.reshape(N, Hp, W, C2)[:, :H]               # drop padded-grid rows
    return jnp.transpose(out, (0, 3, 1, 2))              # NHWC -> NCHW


# --------------------------- pure-JAX reference ----------------------------- #
def reference_block(x_nhwc, w_oihw, params):
    w_hwio = jnp.transpose(w_oihw, (2, 3, 1, 0))
    y = jax.lax.conv_general_dilated(
        x_nhwc, w_hwio, window_strides=(1, 1), padding="SAME",
        dimension_numbers=("NHWC", "HWIO", "NHWC"),
        precision=jax.lax.Precision.HIGHEST)
    bias, gamma, beta, mean, var = params
    y = y + bias
    y = gamma * (y - mean) / jnp.sqrt(var + 1e-5) + beta
    return jnp.maximum(y, 0.0)


def reference_forward(x_nchw, params):
    x = jnp.transpose(x_nchw, (0, 2, 3, 1))
    x = reference_block(x, params["w1"], params["bn1"])
    x = reference_block(x, params["w2"], params["bn2"])
    return jnp.transpose(x, (0, 3, 1, 2))


# --------------------------------- main ------------------------------------ #
def make_params(key, cin, c1, c2):
    ks = jax.random.split(key, 12)

    def bn(kg, kb, km, kv, c):
        gamma = 0.5 + jax.random.uniform(kg, (c,), jnp.float32)
        beta = 0.1 * jax.random.normal(kb, (c,), jnp.float32)
        mean = 0.1 * jax.random.normal(km, (c,), jnp.float32)
        var = 0.5 + jax.random.uniform(kv, (c,), jnp.float32)
        return gamma, beta, mean, var

    w1 = 0.1 * jax.random.normal(ks[0], (c1, cin, 3, 3), jnp.float32)
    b1 = 0.05 * jax.random.normal(ks[1], (c1,), jnp.float32)
    w2 = 0.1 * jax.random.normal(ks[2], (c2, c1, 3, 3), jnp.float32)
    b2 = 0.05 * jax.random.normal(ks[3], (c2,), jnp.float32)
    return {
        "w1": w1, "bn1": (b1,) + bn(ks[4], ks[5], ks[6], ks[7], c1),
        "w2": w2, "bn2": (b2,) + bn(ks[8], ks[9], ks[10], ks[11], c2),
    }


if __name__ == "__main__":
    key = jax.random.PRNGKey(0)
    kx, kp = jax.random.split(key)

    N, Cin, H, W = 2, 4, 16, 16          # input NCHW (as PyTorch)
    C1, C2 = 8, 16
    x = jax.random.normal(kx, (N, Cin, H, W), jnp.float32)
    params = make_params(kp, Cin, C1, C2)

    # images per grid step: largest divisor of N that is <= 8 (M = B*(H+2) rows
    # per matmul; for larger N the grid stays even so both v7x TCs get work).
    B = max(b for b in range(1, min(N, 8) + 1) if N % b == 0)

    # one-time weight/shift preprocessing (NOT inside the per-call forward)
    prep = prepare_encoder_operands(params, H=H, W=W, batch_block=B)
    prep = jax.block_until_ready(prep)

    out = jax.block_until_ready(base_encoder_forward(x, prep, block_b=B))
    ref = jax.block_until_ready(reference_forward(x, params))

    assert out.shape == (N, C2, H, W), out.shape
    err = float(jnp.max(jnp.abs(out - ref)))
    assert err < 1e-4, err
    print("KERNEL_OK")
</pallas_src>

<mosaic_0001>
module attributes {stable_mosaic.version = 11 : i64} {
  func.func @_encoder_kernel(%arg0: i32, %arg1: memref<1x3x36x80xf32, #tpu.memory_space<vmem>>, %arg2: memref<3x80x144xf32, #tpu.memory_space<vmem>>, %arg3: memref<36x144xf32, #tpu.memory_space<vmem>>, %arg4: memref<3x144x256xf32, #tpu.memory_space<vmem>>, %arg5: memref<1x256xf32, #tpu.memory_space<vmem>>, %arg6: memref<1x36x256xf32, #tpu.memory_space<vmem>>, %arg7: memref<38x144xf32, #tpu.memory_space<vmem>>) attributes {dimension_semantics = [#tpu.dimension_semantics<parallel>], iteration_bounds = array<i64: 1>, scalar_prefetch = 0 : i64, scratch_operands = 1 : i64, tpu.core_type = #tpu.core_type<tc>, window_params = [{transform_indices = @transform_0, window_bounds = array<i64: 1, 3, 36, 80>}, {pipeline_mode = #tpu.pipeline_mode<synchronous>, transform_indices = @transform_1, window_bounds = array<i64: 3, 80, 144>}, {pipeline_mode = #tpu.pipeline_mode<synchronous>, transform_indices = @transform_2, window_bounds = array<i64: 36, 144>}, {pipeline_mode = #tpu.pipeline_mode<synchronous>, transform_indices = @transform_3, window_bounds = array<i64: 3, 144, 256>}, {pipeline_mode = #tpu.pipeline_mode<synchronous>, transform_indices = @transform_4, window_bounds = array<i64: 1, 256>}, {transform_indices = @transform_5, window_bounds = array<i64: 1, 36, 256>}]} {
    %c0 = arith.constant 0 : index
    %c0_0 = arith.constant 0 : index
    %c0_1 = arith.constant 0 : index
    %c0_2 = arith.constant 0 : index
    %0 = vector.load %arg1[%c0, %c0_0, %c0_1, %c0_2] : memref<1x3x36x80xf32, #tpu.memory_space<vmem>>, vector<1x1x36x80xf32>
    %1 = vector.shape_cast %0 : vector<1x1x36x80xf32> to vector<36x80xf32>
    %c0_3 = arith.constant 0 : index
    %c0_4 = arith.constant 0 : index
    %c0_5 = arith.constant 0 : index
    %2 = vector.load %arg2[%c0_3, %c0_4, %c0_5] : memref<3x80x144xf32, #tpu.memory_space<vmem>>, vector<1x80x144xf32>
    %3 = vector.shape_cast %2 : vector<1x80x144xf32> to vector<80x144xf32>
    %cst = arith.constant dense<0.000000e+00> : vector<36x144xf32>
    %4 = tpu.matmul %1, %3, %cst {dimension_numbers = #tpu.dot_dimension_numbers<[1], [0], [0], [1], [0, 0, 1, 1], [], []>} : vector<36x80xf32>, vector<80x144xf32>, vector<36x144xf32> -> vector<36x144xf32>
    %c0_6 = arith.constant 0 : index
    %c1 = arith.constant 1 : index
    %c0_7 = arith.constant 0 : index
    %c0_8 = arith.constant 0 : index
    %5 = vector.load %arg1[%c0_6, %c1, %c0_7, %c0_8] : memref<1x3x36x80xf32, #tpu.memory_space<vmem>>, vector<1x1x36x80xf32>
    %6 = vector.shape_cast %5 : vector<1x1x36x80xf32> to vector<36x80xf32>
    %c1_9 = arith.constant 1 : index
    %c0_10 = arith.constant 0 : index
    %c0_11 = arith.constant 0 : index
    %7 = vector.load %arg2[%c1_9, %c0_10, %c0_11] : memref<3x80x144xf32, #tpu.memory_space<vmem>>, vector<1x80x144xf32>
    %8 = vector.shape_cast %7 : vector<1x80x144xf32> to vector<80x144xf32>
    %cst_12 = arith.constant dense<0.000000e+00> : vector<36x144xf32>
    %9 = tpu.matmul %6, %8, %cst_12 {dimension_numbers = #tpu.dot_dimension_numbers<[1], [0], [0], [1], [0, 0, 1, 1], [], []>} : vector<36x80xf32>, vector<80x144xf32>, vector<36x144xf32> -> vector<36x144xf32>
    %10 = arith.addf %4, %9 : vector<36x144xf32>
    %c0_13 = arith.constant 0 : index
    %c2 = arith.constant 2 : index
    %c0_14 = arith.constant 0 : index
    %c0_15 = arith.constant 0 : index
    %11 = vector.load %arg1[%c0_13, %c2, %c0_14, %c0_15] : memref<1x3x36x80xf32, #tpu.memory_space<vmem>>, vector<1x1x36x80xf32>
    %12 = vector.shape_cast %11 : vector<1x1x36x80xf32> to vector<36x80xf32>
    %c2_16 = arith.constant 2 : index
    %c0_17 = arith.constant 0 : index
    %c0_18 = arith.constant 0 : index
    %13 = vector.load %arg2[%c2_16, %c0_17, %c0_18] : memref<3x80x144xf32, #tpu.memory_space<vmem>>, vector<1x80x144xf32>
    %14 = vector.shape_cast %13 : vector<1x80x144xf32> to vector<80x144xf32>
    %cst_19 = arith.constant dense<0.000000e+00> : vector<36x144xf32>
    %15 = tpu.matmul %12, %14, %cst_19 {dimension_numbers = #tpu.dot_dimension_numbers<[1], [0], [0], [1], [0, 0, 1, 1], [], []>} : vector<36x80xf32>, vector<80x144xf32>, vector<36x144xf32> -> vector<36x144xf32>
    %16 = arith.addf %10, %15 : vector<36x144xf32>
    %c0_20 = arith.constant 0 : index
    %c0_21 = arith.constant 0 : index
    %17 = vector.load %arg3[%c0_20, %c0_21] : memref<36x144xf32, #tpu.memory_space<vmem>>, vector<36x144xf32>
    %18 = arith.addf %16, %17 : vector<36x144xf32>
    %cst_22 = arith.constant 0.000000e+00 : f32
    %19 = vector.broadcast %cst_22 : f32 to vector<36x144xf32>
    %20 = arith.maximumf %18, %19 : vector<36x144xf32>
    %c0_23 = arith.constant 0 : index
    %c0_24 = arith.constant 0 : index
    %21 = vector.load %arg7[%c0_23, %c0_24] : memref<38x144xf32, #tpu.memory_space<vmem>>, vector<36x144xf32>
    tpu.vector_store %arg7[%c0_23, %c0_24], %20 {strides = array<i32>} : memref<38x144xf32, #tpu.memory_space<vmem>>, vector<36x144xf32>,
    %cst_25 = arith.constant 0.000000e+00 : f32
    %22 = vector.broadcast %cst_25 : f32 to vector<2x144xf32>
    %c36 = arith.constant 36 : index
    %c0_26 = arith.constant 0 : index
    %23 = vector.load %arg7[%c36, %c0_26] : memref<38x144xf32, #tpu.memory_space<vmem>>, vector<2x144xf32>
    tpu.vector_store %arg7[%c36, %c0_26], %22 {strides = array<i32>} : memref<38x144xf32, #tpu.memory_space<vmem>>, vector<2x144xf32>,
    %c0_27 = arith.constant 0 : index
    %c0_28 = arith.constant 0 : index
    %24 = vector.load %arg7[%c0_27, %c0_28] : memref<38x144xf32, #tpu.memory_space<vmem>>, vector<36x144xf32>
    %c0_29 = arith.constant 0 : index
    %c0_30 = arith.constant 0 : index
    %c0_31 = arith.constant 0 : index
    %25 = vector.load %arg4[%c0_29, %c0_30, %c0_31] : memref<3x144x256xf32, #tpu.memory_space<vmem>>, vector<1x144x256xf32>
    %26 = vector.shape_cast %25 : vector<1x144x256xf32> to vector<144x256xf32>
    %cst_32 = arith.constant dense<0.000000e+00> : vector<36x256xf32>
    %27 = tpu.matmul %24, %26, %cst_32 {dimension_numbers = #tpu.dot_dimension_numbers<[1], [0], [0], [1], [0, 0, 1, 1], [], []>} : vector<36x144xf32>, vector<144x256xf32>, vector<36x256xf32> -> vector<36x256xf32>
    %c1_33 = arith.constant 1 : index
    %c0_34 = arith.constant 0 : index
    %28 = vector.load %arg7[%c1_33, %c0_34] : memref<38x144xf32, #tpu.memory_space<vmem>>, vector<36x144xf32>
    %c1_35 = arith.constant 1 : index
    %c0_36 = arith.constant 0 : index
    %c0_37 = arith.constant 0 : index
    %29 = vector.load %arg4[%c1_35, %c0_36, %c0_37] : memref<3x144x256xf32, #tpu.memory_space<vmem>>, vector<1x144x256xf32>
    %30 = vector.shape_cast %29 : vector<1x144x256xf32> to vector<144x256xf32>
    %cst_38 = arith.constant dense<0.000000e+00> : vector<36x256xf32>
    %31 = tpu.matmul %28, %30, %cst_38 {dimension_numbers = #tpu.dot_dimension_numbers<[1], [0], [0], [1], [0, 0, 1, 1], [], []>} : vector<36x144xf32>, vector<144x256xf32>, vector<36x256xf32> -> vector<36x256xf32>
    %32 = arith.addf %27, %31 : vector<36x256xf32>
    %c2_39 = arith.constant 2 : index
    %c0_40 = arith.constant 0 : index
    %33 = vector.load %arg7[%c2_39, %c0_40] : memref<38x144xf32, #tpu.memory_space<vmem>>, vector<36x144xf32>
    %c2_41 = arith.constant 2 : index
    %c0_42 = arith.constant 0 : index
    %c0_43 = arith.constant 0 : index
    %34 = vector.load %arg4[%c2_41, %c0_42, %c0_43] : memref<3x144x256xf32, #tpu.memory_space<vmem>>, vector<1x144x256xf32>
    %35 = vector.shape_cast %34 : vector<1x144x256xf32> to vector<144x256xf32>
    %cst_44 = arith.constant dense<0.000000e+00> : vector<36x256xf32>
    %36 = tpu.matmul %33, %35, %cst_44 {dimension_numbers = #tpu.dot_dimension_numbers<[1], [0], [0], [1], [0, 0, 1, 1], [], []>} : vector<36x144xf32>, vector<144x256xf32>, vector<36x256xf32> -> vector<36x256xf32>
    %37 = arith.addf %32, %36 : vector<36x256xf32>
    %c0_45 = arith.constant 0 : index
    %c0_46 = arith.constant 0 : index
    %38 = vector.load %arg5[%c0_45, %c0_46] : memref<1x256xf32, #tpu.memory_space<vmem>>, vector<1x256xf32>
    %39 = vector.broadcast %38 : vector<1x256xf32> to vector<36x256xf32>
    %40 = arith.addf %37, %39 : vector<36x256xf32>
    %cst_47 = arith.constant 0.000000e+00 : f32
    %41 = vector.broadcast %cst_47 : f32 to vector<36x256xf32>
    %42 = arith.maximumf %40, %41 : vector<36x256xf32>
    %c0_48 = arith.constant 0 : index
    %c0_49 = arith.constant 0 : index
    %c0_50 = arith.constant 0 : index
    %43 = vector.load %arg6[%c0_48, %c0_49, %c0_50] : memref<1x36x256xf32, #tpu.memory_space<vmem>>, vector<1x36x256xf32>
    %44 = vector.shape_cast %43 : vector<1x36x256xf32> to vector<36x256xf32>
    %45 = vector.shape_cast %42 : vector<36x256xf32> to vector<1x36x256xf32>
    tpu.vector_store %arg6[%c0_48, %c0_49, %c0_50], %45 {strides = array<i32>} : memref<1x36x256xf32, #tpu.memory_space<vmem>>, vector<1x36x256xf32>,
    return
  }
  func.func @transform_0(%arg0: i32) -> (i32, i32, i32, i32) {
    %c0_i32 = arith.constant 0 : i32
    %c0_i32_0 = arith.constant 0 : i32
    %c0_i32_1 = arith.constant 0 : i32
    %c0_i32_2 = arith.constant 0 : i32
    return %arg0, %c0_i32, %c0_i32_0, %c0_i32_1 : i32, i32, i32, i32
  }
  func.func @transform_1(%arg0: i32) -> (i32, i32, i32) {
    %c0_i32 = arith.constant 0 : i32
    %c0_i32_0 = arith.constant 0 : i32
    %c0_i32_1 = arith.constant 0 : i32
    %c0_i32_2 = arith.constant 0 : i32
    return %c0_i32, %c0_i32_0, %c0_i32_1 : i32, i32, i32
  }
  func.func @transform_2(%arg0: i32) -> (i32, i32) {
    %c0_i32 = arith.constant 0 : i32
    %c0_i32_0 = arith.constant 0 : i32
    %c0_i32_1 = arith.constant 0 : i32
    return %c0_i32, %c0_i32_0 : i32, i32
  }
  func.func @transform_3(%arg0: i32) -> (i32, i32, i32) {
    %c0_i32 = arith.constant 0 : i32
    %c0_i32_0 = arith.constant 0 : i32
    %c0_i32_1 = arith.constant 0 : i32
    %c0_i32_2 = arith.constant 0 : i32
    return %c0_i32, %c0_i32_0, %c0_i32_1 : i32, i32, i32
  }
  func.func @transform_4(%arg0: i32) -> (i32, i32) {
    %c0_i32 = arith.constant 0 : i32
    %c0_i32_0 = arith.constant 0 : i32
    %c0_i32_1 = arith.constant 0 : i32
    return %c0_i32, %c0_i32_0 : i32, i32
  }
  func.func @transform_5(%arg0: i32) -> (i32, i32, i32) {
    %c0_i32 = arith.constant 0 : i32
    %c0_i32_0 = arith.constant 0 : i32
    %c0_i32_1 = arith.constant 0 : i32
    return %arg0, %c0_i32, %c0_i32_0 : i32, i32, i32
  }
}

</mosaic_0001>

<bundles_post_ra>
// kernel: base_encoder_forward.1
= control target key start
LH: loop header
LB: loop body
LE: loop exit
PB: predicated region body
PF: predicated region fallthrough
CT: control target
= control target key end

     0   :  { %v1201_v3 = vmov 0.0   ;;  %vm72_vm0 = vcmask 654336   ;;  %vm483_vm1 = vcmask 128004   ;;  %vm471_vm2 = vcmask 130048   ;;  %s1941_s1 = inlined_call_operand.vmem [shape: f32[3,80,144], index: 1, kind: input, shape index: {}]   ;;  %s1942_s0 = inlined_call_operand.vmem [shape: f32[1,3,36,80], index: 0, kind: input, shape index: {}]   ;;  %s1943_s3 = inlined_call_operand.vmem [shape: f32[3,144,256], index: 3, kind: input, shape index: {}]   ;;  %s1944_s2 = inlined_call_operand.vmem [shape: f32[36,144], index: 2, kind: input, shape index: {}]   ;;  %s1945_s4 = inlined_call_operand.vmem [shape: f32[1,256], index: 4, kind: input, shape index: {}]   ;;  %s1946_s5 = inlined_call_operand.vmem [shape: f32[1,36,256], index: 5, kind: output, shape index: {}]  }
   0x1   :  { %v1072_v0 = vld [vmem:[%s1941_s1 + $0x138] sm:$0xff]  ;;  %v1071_v2 = vld [vmem:[%s1941_s1 + $0x130] sm:$0xff]  ;;  %152 = vmatprep.mubr.f32.mxu0 %v1201_v3  ;;  %482 = vst [vmem:[#allocation2 + $0x40] sm:$0x30] %v1201_v3  ;;  %262 = vmatprep.mubr.f32.mxu1 %v1201_v3  ;;  %v1070_v5 = vld [vmem:[%s1941_s1 + $0x128] sm:$0xff]  ;;  %vm582_vm3 = vcmask 1046528  }
   0x2   :  { %v44_v1 = vld [vmem:[%s1941_s1 + $0x98] sm:$0xff]  ;;  %100 = vmatprep.subr.mxu0 %v1072_v0  ;;  %v43_v4 = vld [vmem:[%s1941_s1 + $0x90] sm:$0xff]  ;;  %v42_v6 = vld [vmem:[%s1941_s1 + $0x88] sm:$0xff]  ;;  %484 = vst.msk [vmem:[#allocation2 + $0x48] sm:$0x30] %vm483_vm1, %v1201_v3  ;;  %vm480_vm4 = vcmask 125952  }
   0x3   :  { %210 = vmatprep.subr.mxu1 %v44_v1  ;;  %101 = vmatpush1.msra.mxu0 %v1071_v2  ;;  %v1069_v7 = vld [vmem:[%s1941_s1 + $0x120] sm:$0xff]  ;;  %v1068_v9 = vld [vmem:[%s1941_s1 + $0x118] sm:$0xff]  ;;  %v1067_v11 = vld [vmem:[%s1941_s1 + $0x110] sm:$0xff]  ;;  %vm863_vm5 = vcmask 1045504  }
   0x4   :  { %211 = vmatpush1.msra.mxu1 %v43_v4  ;;  %v41_v8 = vld [vmem:[%s1941_s1 + $0x80] sm:$0xff]  ;;  %102 = vmatprep.subr.mxu0 %v1070_v5  ;;  %v40_v10 = vld [vmem:[%s1941_s1 + $0x78] sm:$0xff]  ;;  %v39_v12 = vld [vmem:[%s1941_s1 + $0x70] sm:$0xff] }
   0x5   :  { %212 = vmatprep.subr.mxu1 %v42_v6  ;;  %103 = vmatpush1.msra.mxu0 %v1069_v7  ;;  %v1066_v13 = vld [vmem:[%s1941_s1 + $0x108] sm:$0xff]  ;;  %v1065_v15 = vld [vmem:[%s1941_s1 + $0x100] sm:$0xff]  ;;  %v1064_v17 = vld [vmem:[%s1941_s1 + $0xf8] sm:$0xff] }
   0x6   :  { %213 = vmatpush1.msra.mxu1 %v41_v8  ;;  %v38_v14 = vld [vmem:[%s1941_s1 + $0x68] sm:$0xff]  ;;  %104 = vmatprep.subr.mxu0 %v1068_v9  ;;  %v37_v16 = vld [vmem:[%s1941_s1 + $0x60] sm:$0xff]  ;;  %v36_v18 = vld [vmem:[%s1941_s1 + $0x58] sm:$0xff] }
   0x7   :  { %214 = vmatprep.subr.mxu1 %v40_v10  ;;  %105 = vmatpush1.msra.mxu0 %v1067_v11  ;;  %v1063_v19 = vld [vmem:[%s1941_s1 + $0xf0] sm:$0xff]  ;;  %v1062_v21 = vld [vmem:[%s1941_s1 + $0xe8] sm:$0xff]  ;;  %v1061_v23 = vld [vmem:[%s1941_s1 + $0xe0] sm:$0xff] }
   0x8   :  { %215 = vmatpush1.msra.mxu1 %v39_v12  ;;  %106 = vmatprep.subr.mxu0 %v1066_v13  ;;  %v35_v20 = vld [vmem:[%s1941_s1 + $0x50] sm:$0xff]  ;;  %v34_v22 = vld [vmem:[%s1941_s1 + $0x48] sm:$0xff]  ;;  %v33_v24 = vld [vmem:[%s1941_s1 + $0x40] sm:$0xff] }
   0x9   :  { %216 = vmatprep.subr.mxu1 %v38_v14  ;;  %107 = vmatpush1.msra.mxu0 %v1065_v15  ;;  %v1060_v25 = vld [vmem:[%s1941_s1 + $0xd8] sm:$0xff]  ;;  %v1059_v27 = vld [vmem:[%s1941_s1 + $0xd0] sm:$0xff]  ;;  %v1058_v29 = vld [vmem:[%s1941_s1 + $0xc8] sm:$0xff] }
   0xa   :  { %217 = vmatpush1.msra.mxu1 %v37_v16  ;;  %108 = vmatprep.subr.mxu0 %v1064_v17  ;;  %v32_v26 = vld [vmem:[%s1941_s1 + $0x38] sm:$0xff]  ;;  %v31_v28 = vld [vmem:[%s1941_s1 + $0x30] sm:$0xff]  ;;  %v30_v30 = vld [vmem:[%s1941_s1 + $0x28] sm:$0xff] }
   0xb   :  { %218 = vmatprep.subr.mxu1 %v36_v18  ;;  %109 = vmatpush1.msra.mxu0 %v1063_v19  ;;  %v1057_v31 = vld [vmem:[%s1941_s1 + $0xc0] sm:$0xff]  ;;  %v1056_v33 = vld [vmem:[%s1941_s1 + $0xb8] sm:$0xff]  ;;  %v1055_v35 = vld [vmem:[%s1941_s1 + $0xb0] sm:$0xff] }
   0xc   :  { %219 = vmatpush1.msra.mxu1 %v35_v20  ;;  %110 = vmatprep.subr.mxu0 %v1062_v21  ;;  %v29_v32 = vld [vmem:[%s1941_s1 + $0x20] sm:$0xff]  ;;  %v28_v34 = vld [vmem:[%s1941_s1 + $0x18] sm:$0xff]  ;;  %v27_v36 = vld [vmem:[%s1941_s1 + $0x10] sm:$0xff] }
   0xd   :  { %220 = vmatprep.subr.mxu1 %v34_v22  ;;  %111 = vmatpush1.msra.mxu0 %v1061_v23  ;;  %v1054_v37 = vld [vmem:[%s1941_s1 + $0xa8] sm:$0xff]  ;;  %v1053_v39 = vld [vmem:[%s1941_s1 + $0xa0] sm:$0xff]  ;;  %v1107_v43 = vld [vmem:[%s1941_s1 + $0x1d8] sm:$0xff] }
   0xe   :  { %221 = vmatpush1.msra.mxu1 %v33_v24  ;;  %112 = vmatprep.subr.mxu0 %v1060_v25  ;;  %v26_v38 = vld [vmem:[%s1941_s1 + $0x8] sm:$0xff]  ;;  %v25_v40 = vld [vmem:[%s1941_s1] sm:$0xff]  ;;  %v1106_v44 = vld [vmem:[%s1941_s1 + $0x1d0] sm:$0xff] }
   0xf   :  { %222 = vmatprep.subr.mxu1 %v32_v26  ;;  %113 = vmatpush1.msra.mxu0 %v1059_v27  ;;  %v1048_v41 = vld [vmem:[%s1942_s0 + $0x28] sm:$0xff]  ;;  %v20_v42 = vld [vmem:[%s1942_s0] sm:$0xff]  ;;  %v1049_v48 = vld [vmem:[%s1942_s0 + $0x30] sm:$0xff] }
  0x10   :  { %223 = vmatpush1.msra.mxu1 %v31_v28  ;;  %114 = vmatprep.subr.mxu0 %v1058_v29  ;;  %v1105_v45 = vld [vmem:[%s1941_s1 + $0x1c8] sm:$0xff]  ;;  %v1104_v46 = vld [vmem:[%s1941_s1 + $0x1c0] sm:$0xff]  ;;  %v1103_v49 = vld [vmem:[%s1941_s1 + $0x1b8] sm:$0xff] }
  0x11   :  { %224 = vmatprep.subr.mxu1 %v30_v30  ;;  %115 = vmatpush1.msra.mxu0 %v1057_v31  ;;  %v21_v47 = vld [vmem:[%s1942_s0 + $0x8] sm:$0xff]  ;;  %v1102_v50 = vld [vmem:[%s1941_s1 + $0x1b0] sm:$0xff]  ;;  %v1100_v52 = vld [vmem:[%s1941_s1 + $0x1a0] sm:$0xff] }
  0x12   :  { %225 = vmatpush1.msra.mxu1 %v29_v32  ;;  %116 = vmatprep.subr.mxu0 %v1056_v33  ;;  %v1101_v51 = vld [vmem:[%s1941_s1 + $0x1a8] sm:$0xff]  ;;  %v22_v53 = vld [vmem:[%s1942_s0 + $0x10] sm:$0xff]  ;;  %v1050_v54 = vld [vmem:[%s1942_s0 + $0x38] sm:$0xff] }
  0x13   :  { %226 = vmatprep.subr.mxu1 %v28_v34  ;;  %117 = vmatpush1.msra.mxu0 %v1055_v35  ;;  %v1099_v55 = vld [vmem:[%s1941_s1 + $0x198] sm:$0xff]  ;;  %v1098_v56 = vld [vmem:[%s1941_s1 + $0x190] sm:$0xff]  ;;  %v1097_v57 = vld [vmem:[%s1941_s1 + $0x188] sm:$0xff] }
  0x14   :  { %227 = vmatpush1.msra.mxu1 %v27_v36  ;;  %118 = vmatprep.subr.mxu0 %v1054_v37  ;;  %v1096_v58 = vld [vmem:[%s1941_s1 + $0x180] sm:$0xff]  ;;  %v23_v59 = vld [vmem:[%s1942_s0 + $0x18] sm:$0xff]  ;;  %v1094_v62 = vld [vmem:[%s1941_s1 + $0x170] sm:$0xff] }
  0x15   :  { %228 = vmatprep.subr.mxu1 %v26_v38  ;;  %119 = vmatpush1.msra.mxu0 %v1053_v39  ;;  %v1051_v60 = vld [vmem:[%s1942_s0 + $0x40] sm:$0xff]  ;;  %v1095_v61 = vld [vmem:[%s1941_s1 + $0x178] sm:$0xff]  ;;  %v1093_v63 = vld [vmem:[%s1941_s1 + $0x168] sm:$0xff] }
  0x16   :  { %229 = vmatpush1.msra.mxu1 %v25_v40  ;;  %1073 = vmatmul.mubr.msk.f32.vlgmr.msra.gmra.mxu0 %vm72_vm0, %v1048_v41  ;;  %v1092_v0 = vld [vmem:[%s1941_s1 + $0x160] sm:$0xff]  ;;  %v1052_v2 = vld [vmem:[%s1942_s0 + $0x48] sm:$0xf]  ;;  %v1091_v4 = vld [vmem:[%s1941_s1 + $0x158] sm:$0xff] }
  0x17   :  { %1078 = vmatmul.mubr.msk.f32.vlgmr.msra.gmra.mxu1 %vm72_vm0, %v20_v42  ;;  %347 = vmatprep.subr.mxu0 %v1107_v43  ;;  %v24_v1 = vld [vmem:[%s1942_s0 + $0x20] sm:$0xf]  ;;  %v1090_v5 = vld [vmem:[%s1941_s1 + $0x150] sm:$0xff]  ;;  %v1089_v6 = vld [vmem:[%s1941_s1 + $0x148] sm:$0xff] }
  0x18   :  { %158 = vmatprep.mubr.f32.mxu0 %v1201_v3  ;;  %348 = vmatpush1.msra.mxu0 %v1106_v44  ;;  %v1088_v7 = vld [vmem:[%s1941_s1 + $0x140] sm:$0xff]  ;;  %v1083_v8 = vld [vmem:[%s1942_s0 + $0x50] sm:$0xff]  ;;  %v1084_v9 = vld [vmem:[%s1942_s0 + $0x58] sm:$0xff] }
  0x19   :  { %268 = vmatprep.mubr.f32.mxu1 %v1201_v3  ;;  %349 = vmatprep.subr.mxu0 %v1105_v45  ;;  %v1085_v10 = vld [vmem:[%s1942_s0 + $0x60] sm:$0xff]  ;;  %v1086_v11 = vld [vmem:[%s1942_s0 + $0x68] sm:$0xff]  ;;  %v1087_v12 = vld [vmem:[%s1942_s0 + $0x70] sm:$0xf] }
  0x1a   :  { %350 = vmatpush1.msra.mxu0 %v1104_v46  ;;  %v526_v13 = vld [vmem:[%s1943_s3 + $0xf8] sm:$0xff]  ;;  %v525_v14 = vld [vmem:[%s1943_s3 + $0xf0] sm:$0xff]  ;;  %v524_v15 = vld [vmem:[%s1943_s3 + $0xe8] sm:$0xff] }
  0x1b   :  { %1079 = vmatmul.mubr.msk.f32.gmra.mxu1 %vm72_vm0, %v21_v47  ;;  %1074 = vmatmul.mubr.msk.f32.gmra.mxu0 %vm72_vm0, %v1049_v48  ;;  %v523_v16 = vld [vmem:[%s1943_s3 + $0xe0] sm:$0xff]  ;;  %v522_v17 = vld [vmem:[%s1943_s3 + $0xd8] sm:$0xff]  ;;  %v521_v18 = vld [vmem:[%s1943_s3 + $0xd0] sm:$0xff] }
  0x1c   :  { %351 = vmatprep.subr.mxu0 %v1103_v49  ;;  %164 = vmatprep.mubr.f32.mxu0 %v1201_v3  ;;  %v1144_v19 = vld [vmem:[%s1943_s3 + $0x218] sm:$0xff]  ;;  %v520_v20 = vld [vmem:[%s1943_s3 + $0xc8] sm:$0xff]  ;;  %v1143_v21 = vld [vmem:[%s1943_s3 + $0x210] sm:$0xff] }
  0x1d   :  { %352 = vmatpush1.msra.mxu0 %v1102_v50  ;;  %274 = vmatprep.mubr.f32.mxu1 %v1201_v3  ;;  %v519_v22 = vld [vmem:[%s1943_s3 + $0xc0] sm:$0xff]  ;;  %v1142_v23 = vld [vmem:[%s1943_s3 + $0x208] sm:$0xff]  ;;  %v518_v24 = vld [vmem:[%s1943_s3 + $0xb8] sm:$0xff] }
  0x1e   :  { %353 = vmatprep.subr.mxu0 %v1101_v51  ;;  %616 = vmatprep.subr.mxu1 %v1144_v19  ;;  %v1141_v25 = vld [vmem:[%s1943_s3 + $0x200] sm:$0xff]  ;;  %v517_v26 = vld [vmem:[%s1943_s3 + $0xb0] sm:$0xff]  ;;  %v1140_v27 = vld [vmem:[%s1943_s3 + $0x1f8] sm:$0xff] }
  0x1f   :  { %354 = vmatpush1.msra.mxu0 %v1100_v52  ;;  %1080 = vmatmul.mubr.msk.f32.gmra.mxu1 %vm72_vm0, %v22_v53  ;;  %v516_v28 = vld [vmem:[%s1943_s3 + $0xa8] sm:$0xff]  ;;  %v1139_v29 = vld [vmem:[%s1943_s3 + $0x1f0] sm:$0xff]  ;;  %v515_v30 = vld [vmem:[%s1943_s3 + $0xa0] sm:$0xff] }
  0x20   :  { %1075 = vmatmul.mubr.msk.f32.gmra.mxu0 %vm72_vm0, %v1050_v54  ;;  %355 = vmatprep.subr.mxu0 %v1099_v55  ;;  %v1138_v31 = vld [vmem:[%s1943_s3 + $0x1e8] sm:$0xff]  ;;  %v514_v32 = vld [vmem:[%s1943_s3 + $0x98] sm:$0xff]  ;;  %v1137_v33 = vld [vmem:[%s1943_s3 + $0x1e0] sm:$0xff] }
  0x21   :  { %356 = vmatpush1.msra.mxu0 %v1098_v56  ;;  %170 = vmatprep.mubr.f32.mxu0 %v1201_v3  ;;  %v513_v34 = vld [vmem:[%s1943_s3 + $0x90] sm:$0xff]  ;;  %v1136_v35 = vld [vmem:[%s1943_s3 + $0x1d8] sm:$0xff]  ;;  %v512_v36 = vld [vmem:[%s1943_s3 + $0x88] sm:$0xff] }
  0x22   :  { %357 = vmatprep.subr.mxu0 %v1097_v57  ;;  %280 = vmatprep.mubr.f32.mxu1 %v1201_v3  ;;  %v1135_v37 = vld [vmem:[%s1943_s3 + $0x1d0] sm:$0xff]  ;;  %v511_v38 = vld [vmem:[%s1943_s3 + $0x80] sm:$0xff]  ;;  %v1134_v39 = vld [vmem:[%s1943_s3 + $0x1c8] sm:$0xff] }
  0x23   :  { %358 = vmatpush1.msra.mxu0 %v1096_v58  ;;  %1081 = vmatmul.mubr.msk.f32.gmra.mxu1 %vm72_vm0, %v23_v59  ;;  %v510_v40 = vld [vmem:[%s1943_s3 + $0x78] sm:$0xff]  ;;  %v1133_v41 = vld [vmem:[%s1943_s3 + $0x1c0] sm:$0xff]  ;;  %v509_v42 = vld [vmem:[%s1943_s3 + $0x70] sm:$0xff] }
  0x24   :  { %1076 = vmatmul.mubr.msk.f32.gmra.mxu0 %vm72_vm0, %v1051_v60  ;;  %359 = vmatprep.subr.mxu0 %v1095_v61  ;;  %v1132_v43 = vld [vmem:[%s1943_s3 + $0x1b8] sm:$0xff]  ;;  %v508_v44 = vld [vmem:[%s1943_s3 + $0x68] sm:$0xff]  ;;  %v1131_v45 = vld [vmem:[%s1943_s3 + $0x1b0] sm:$0xff] }
  0x25   :  { %360 = vmatpush1.msra.mxu0 %v1094_v62  ;;  %176 = vmatprep.mubr.f32.mxu0 %v1201_v3  ;;  %v507_v46 = vld [vmem:[%s1943_s3 + $0x60] sm:$0xff]  ;;  %v1130_v47 = vld [vmem:[%s1943_s3 + $0x1a8] sm:$0xff]  ;;  %v506_v48 = vld [vmem:[%s1943_s3 + $0x58] sm:$0xff] }
  0x26   :  { %361 = vmatprep.subr.mxu0 %v1093_v63  ;;  %286 = vmatprep.mubr.f32.mxu1 %v1201_v3  ;;  %v1129_v49 = vld [vmem:[%s1943_s3 + $0x1a0] sm:$0xff]  ;;  %v505_v50 = vld [vmem:[%s1943_s3 + $0x50] sm:$0xff]  ;;  %v1128_v51 = vld [vmem:[%s1943_s3 + $0x198] sm:$0xff] }
  0x27   :  { %362 = vmatpush1.msra.mxu0 %v1092_v0  ;;  %1082 = vmatmul.mubr.msk.f32.gmra.mxu1 %vm72_vm0, %v24_v1  ;;  %v504_v52 = vld [vmem:[%s1943_s3 + $0x48] sm:$0xff]  ;;  %v1127_v53 = vld [vmem:[%s1943_s3 + $0x190] sm:$0xff]  ;;  %v503_v54 = vld [vmem:[%s1943_s3 + $0x40] sm:$0xff] }
  0x28   :  { %1077 = vmatmul.mubr.msk.f32.gmra.mxu0 %vm72_vm0, %v1052_v2  ;;  %363 = vmatprep.subr.mxu0 %v1091_v4  ;;  %v1126_v55 = vld [vmem:[%s1943_s3 + $0x188] sm:$0xff]  ;;  %v502_v56 = vld [vmem:[%s1943_s3 + $0x38] sm:$0xff]  ;;  %v1125_v57 = vld [vmem:[%s1943_s3 + $0x180] sm:$0xff] }
  0x29   :  { %364 = vmatpush1.msra.mxu0 %v1090_v5  ;;  %399 = vmatprep.mubr.f32.mxu0 %v1201_v3  ;;  %v501_v58 = vld [vmem:[%s1943_s3 + $0x30] sm:$0xff]  ;;  %v1124_v59 = vld [vmem:[%s1943_s3 + $0x178] sm:$0xff]  ;;  %v500_v60 = vld [vmem:[%s1943_s3 + $0x28] sm:$0xff] }
  0x2a   :  { %365 = vmatprep.subr.mxu0 %v1089_v6  ;;  %617 = vmatpush1.msra.mxu1 %v1143_v21  ;;  %v1123_v61 = vld [vmem:[%s1943_s3 + $0x170] sm:$0xff]  ;;  %v499_v62 = vld [vmem:[%s1943_s3 + $0x20] sm:$0xff]  ;;  %v1122_v63 = vld [vmem:[%s1943_s3 + $0x168] sm:$0xff] }
  0x2b   :  { %366 = vmatpush1.msra.mxu0 %v1088_v7  ;;  %618 = vmatprep.subr.mxu1 %v1142_v23  ;;  %v498_v0 = vld [vmem:[%s1943_s3 + $0x18] sm:$0xff]  ;;  %v1121_v1 = vld [vmem:[%s1943_s3 + $0x160] sm:$0xff]  ;;  %v497_v2 = vld [vmem:[%s1943_s3 + $0x10] sm:$0xff] }
  0x2c   :  { %1108 = vmatmul.mubr.msk.f32.vlgmr.msra.gmra.mxu0 %vm72_vm0, %v1083_v8  ;;  %723 = vmatprep.subr.mxu0 %v526_v13  ;;  %v1120_v4 = vld [vmem:[%s1943_s3 + $0x158] sm:$0xff]  ;;  %v496_v5 = vld [vmem:[%s1943_s3 + $0x8] sm:$0xff]  ;;  %v1119_v6 = vld [vmem:[%s1943_s3 + $0x150] sm:$0xff] }
  0x2d   :  { %405 = vmatprep.mubr.f32.mxu0 %v1201_v3  ;;  %724 = vmatpush1.msra.mxu0 %v525_v14  ;;  %v495_v7 = vld [vmem:[%s1943_s3] sm:$0xff]  ;;  %v1118_v8 = vld [vmem:[%s1943_s3 + $0x148] sm:$0xff]  ;;  %v1115_v14 = vld [vmem:[%s1943_s3 + $0x130] sm:$0xff] }
  0x2e   :  { %725 = vmatprep.subr.mxu0 %v524_v15  ;;  %619 = vmatpush1.msra.mxu1 %v1141_v25  ;;  %v528_v13 = vld [vmem:[%s1943_s3 + $0x108] sm:$0xff]  ;;  %v527_v15 = vld [vmem:[%s1943_s3 + $0x100] sm:$0xff]  ;;  %v1147_v19 = vld [vmem:[%s1943_s3 + $0x230] sm:$0xff] }
  0x2f   :  { %726 = vmatpush1.msra.mxu0 %v523_v16  ;;  %620 = vmatprep.subr.mxu1 %v1140_v27  ;;  %v1114_v16 = vld [vmem:[%s1943_s3 + $0x128] sm:$0xff]  ;;  %v1145_v21 = vld [vmem:[%s1943_s3 + $0x220] sm:$0xff] }
  0x30   :  { %1109 = vmatmul.mubr.msk.f32.gmra.mxu0 %vm72_vm0, %v1084_v9  ;;  %727 = vmatprep.subr.mxu0 %v522_v17  ;;  %v530_v9 = vld [vmem:[%s1943_s3 + $0x118] sm:$0xff]  ;;  %v1113_v17 = vld [vmem:[%s1943_s3 + $0x120] sm:$0xff] }
  0x31   :  { %411 = vmatprep.mubr.f32.mxu0 %v1201_v3  ;;  %728 = vmatpush1.msra.mxu0 %v521_v18  ;;  %v1148_v18 = vld [vmem:[%s1943_s3 + $0x238] sm:$0xff] }
  0x32   :  { %729 = vmatprep.subr.mxu0 %v520_v20  ;;  %621 = vmatpush1.msra.mxu1 %v1139_v29  ;;  %v1146_v20 = vld [vmem:[%s1943_s3 + $0x228] sm:$0xff] }
  0x33   :  { %730 = vmatpush1.msra.mxu0 %v519_v22  ;;  %622 = vmatprep.subr.mxu1 %v1138_v31  ;;  %v1190_v22 = vld [vmem:[%s1943_s3 + $0x338] sm:$0xff] }
  0x34   :  { %1110 = vmatmul.mubr.msk.f32.gmra.mxu0 %vm72_vm0, %v1085_v10  ;;  %731 = vmatprep.subr.mxu0 %v518_v24  ;;  %v1117_v10 = vld [vmem:[%s1943_s3 + $0x140] sm:$0xff] }
  0x35   :  { %417 = vmatprep.mubr.f32.mxu0 %v1201_v3  ;;  %732 = vmatpush1.msra.mxu0 %v517_v26 }
  0x36   :  { %733 = vmatprep.subr.mxu0 %v516_v28  ;;  %623 = vmatpush1.msra.mxu1 %v1137_v33 }
  0x37   :  { %734 = vmatpush1.msra.mxu0 %v515_v30  ;;  %624 = vmatprep.subr.mxu1 %v1136_v35 }
  0x38   :  { %1111 = vmatmul.mubr.msk.f32.gmra.mxu0 %vm72_vm0, %v1086_v11  ;;  %735 = vmatprep.subr.mxu0 %v514_v32  ;;  %v529_v11 = vld [vmem:[%s1943_s3 + $0x110] sm:$0xff] }
  0x39   :  { %423 = vmatprep.mubr.f32.mxu0 %v1201_v3  ;;  %736 = vmatpush1.msra.mxu0 %v513_v34  ;;  %v440_v3 = vld [vmem:[%s1944_s2] sm:$0xff] }
  0x3a   :  { %737 = vmatprep.subr.mxu0 %v512_v36  ;;  %625 = vmatpush1.msra.mxu1 %v1135_v37 }
  0x3b   :  { %738 = vmatpush1.msra.mxu0 %v511_v38  ;;  %626 = vmatprep.subr.mxu1 %v1134_v39 }
  0x3c   :  { %1112 = vmatmul.mubr.msk.f32.gmra.mxu0 %vm72_vm0, %v1087_v12  ;;  %739 = vmatprep.subr.mxu0 %v510_v40  ;;  %v1116_v12 = vld [vmem:[%s1943_s3 + $0x138] sm:$0xff] }
  0x3d   :  { %627 = vmatpush1.msra.mxu1 %v1133_v41  ;;  %740 = vmatpush1.msra.mxu0 %v509_v42 }
  0x3e   :  { %628 = vmatprep.subr.mxu1 %v1132_v43  ;;  %741 = vmatprep.subr.mxu0 %v508_v44 }
  0x3f   :  { %629 = vmatpush1.msra.mxu1 %v1131_v45  ;;  %742 = vmatpush1.msra.mxu0 %v507_v46  ;;  %v441_v45 = vld [vmem:[%s1944_s2 + $0x8] sm:$0xff] }
  0x40   :  { %630 = vmatprep.subr.mxu1 %v1130_v47  ;;  %743 = vmatprep.subr.mxu0 %v506_v48 }
  0x41   :  { %631 = vmatpush1.msra.mxu1 %v1129_v49  ;;  %744 = vmatpush1.msra.mxu0 %v505_v50  ;;  %v442_v50 = vld [vmem:[%s1944_s2 + $0x10] sm:$0xff] }
  0x42   :  { %632 = vmatprep.subr.mxu1 %v1128_v51  ;;  %745 = vmatprep.subr.mxu0 %v504_v52 }
  0x43   :  { %633 = vmatpush1.msra.mxu1 %v1127_v53  ;;  %746 = vmatpush1.msra.mxu0 %v503_v54 }
  0x44   :  { %634 = vmatprep.subr.mxu1 %v1126_v55  ;;  %747 = vmatprep.subr.mxu0 %v502_v56 }
  0x45   :  { %635 = vmatpush1.msra.mxu1 %v1125_v57  ;;  %748 = vmatpush1.msra.mxu0 %v501_v58  ;;  %v443_v57 = vld [vmem:[%s1944_s2 + $0x18] sm:$0xff] }
  0x46   :  { %636 = vmatprep.subr.mxu1 %v1124_v59  ;;  %749 = vmatprep.subr.mxu0 %v500_v60 }
  0x47   :  { %637 = vmatpush1.msra.mxu1 %v1123_v61  ;;  %750 = vmatpush1.msra.mxu0 %v499_v62 }
  0x48   :  { %638 = vmatprep.subr.mxu1 %v1122_v63  ;;  %751 = vmatprep.subr.mxu0 %v498_v0  ;;  %v444_v63 = vld [vmem:[%s1944_s2 + $0x20] sm:$0xff] }
  0x49   :  { %639 = vmatpush1.msra.mxu1 %v1121_v1  ;;  %752 = vmatpush1.msra.mxu0 %v497_v2 }
  0x4a   :  { %640 = vmatprep.subr.mxu1 %v1120_v4  ;;  %753 = vmatprep.subr.mxu0 %v496_v5 }
  0x4b   :  { %641 = vmatpush1.msra.mxu1 %v1119_v6  ;;  %754 = vmatpush1.msra.mxu0 %v495_v7  ;;  %v445_v7 = vld [vmem:[%s1944_s2 + $0x28] sm:$0xff] }
  0x4c   :  { %642 = vmatprep.subr.mxu1 %v1118_v8  ;;  %783 = vmatprep.subr.mxu0 %v530_v9 }
  0x4d   :  { %643 = vmatpush1.msra.mxu1 %v1117_v10  ;;  %784 = vmatpush2.msra.mxu0 %v529_v11 }
  0x4e   :  { %644 = vmatprep.subr.mxu1 %v1116_v12  ;;  %785 = vmatprep.subr.mxu0 %v528_v13  ;;  %v446_v13 = vld [vmem:[%s1944_s2 + $0x30] sm:$0xff] }
  0x4f   :  { %645 = vmatpush1.msra.mxu1 %v1115_v14  ;;  %786 = vmatpush2.msra.mxu0 %v527_v15 }
  0x50   :  { %646 = vmatprep.subr.mxu1 %v1114_v16 }
  0x51   :  { %647 = vmatpush1.msra.mxu1 %v1113_v17 }
  0x52   :  { %676 = vmatprep.subr.mxu1 %v1148_v18 }
  0x53   :  { %677 = vmatpush2.msra.mxu1 %v1147_v19 }
  0x54   :  { %678 = vmatprep.subr.mxu1 %v1146_v20  ;;  %v447_v20 = vld [vmem:[%s1944_s2 + $0x38] sm:$0xff] }
  0x55   :  { %679 = vmatpush2.msra.mxu1 %v1145_v21 }
  0x56   :  { %897 = vmatprep.subr.mxu1 %v1190_v22 }
  0xd6   :  { %v154_v23 = vpop.f32.mrf.mxu0 }
  0xd7   :  { %v264_v24 = vpop.f32.mrf.mxu1 }
  0xd8   :  { %v156_v25 = vpop.f32.mrf.mxu0  ;;  %v265_v39 = vadd.f32 %v264_v24, %v154_v23 }
  0xd9   :  { %v266_v26 = vpop.f32.mrf.mxu1 }
  0xda   :  { %v267_v41 = vadd.f32 %v266_v26, %v156_v25  ;;  %v448_v26 = vld [vmem:[%s1944_s2 + $0x40] sm:$0xf] }
  0xdb   :  { %v160_v27 = vpop.f32.mrf.mxu0  ;;  %v270_v28 = vpop.f32.mrf.mxu1 }
  0xdc   :  { %v271_v46 = vadd.f32 %v270_v28, %v160_v27 }
  0xdd   :  { %v162_v29 = vpop.f32.mrf.mxu0  ;;  %v272_v31 = vpop.f32.mrf.mxu1 }
  0xde   :  { %v273_v51 = vadd.f32 %v272_v31, %v162_v29 }
  0xdf   :  { %v276_v34 = vpop.f32.mrf.mxu1 }
  0xe0   :  { %v166_v30 = vpop.f32.mrf.mxu0 }
  0xe1   :  { %v278_v37 = vpop.f32.mrf.mxu1  ;;  %v277_v58 = vadd.f32 %v276_v34, %v166_v30  ;;  %v449_v34 = vld [vmem:[%s1944_s2 + $0x48] sm:$0xf] }
  0xe2   :  { %v168_v32 = vpop.f32.mrf.mxu0 }
  0xe3   :  { %v282_v43 = vpop.f32.mrf.mxu1  ;;  %v279_v0 = vadd.f32 %v278_v37, %v168_v32 }
  0xe4   :  { %v172_v33 = vpop.f32.mrf.mxu0 }
  0xe5   :  { %v284_v55 = vpop.f32.mrf.mxu1  ;;  %v283_v8 = vadd.f32 %v282_v43, %v172_v33 }
  0xe6   :  { %v174_v35 = vpop.f32.mrf.mxu0 }
  0xe7   :  { %v288_v5 = vpop.f32.mrf.mxu1  ;;  %v285_v14 = vadd.f32 %v284_v55, %v174_v35 }
  0xe8   :  { %v178_v36 = vpop.f32.mrf.mxu0 }
  0xe9   :  { %v290_v18 = vpop.f32.mrf.mxu1  ;;  %v289_v21 = vadd.f32 %v288_v5, %v178_v36 }
  0xea   :  { %v180_v38 = vpop.f32.mrf.mxu0 }
  0xeb   :  { %v291_v28 = vadd.f32 %v290_v18, %v180_v38  ;;  %v1176_v18 = vld [vmem:[%s1943_s3 + $0x2c8] sm:$0xff] }
  0xec   :  { %v401_v40 = vpop.f32.mrf.mxu0 }
  0xed   :  { %v430_v42 = vadd.f32 %v401_v40, %v265_v39 }
  0xee   :  { %v403_v44 = vpop.f32.mrf.mxu0 }
  0xef   :  { %v450_v47 = vadd.f32 %v440_v3, %v430_v42  ;;  %v431_v48 = vadd.f32 %v403_v44, %v267_v41 }
  0xf0   :  { %v407_v49 = vpop.f32.mrf.mxu0 }
  0xf1   :  { %v460_v52 = vmax.f32 %v450_v47, 0.0  ;;  %v451_v53 = vadd.f32 %v441_v45, %v431_v48  ;;  %v432_v54 = vadd.f32 %v407_v49, %v271_v46  ;;  %v1189_v47 = vld [vmem:[%s1943_s3 + $0x330] sm:$0xff] }
  0xf2   :  { %v409_v56 = vpop.f32.mrf.mxu0 }
  0xf3   :  { %470 = vst [vmem:[#allocation2] sm:$0xff] %v460_v52  ;;  %v461_v59 = vmax.f32 %v451_v53, 0.0  ;;  %v452_v60 = vadd.f32 %v442_v50, %v432_v54  ;;  %v433_v61 = vadd.f32 %v409_v56, %v273_v51  ;;  %v1188_v51 = vld [vmem:[%s1943_s3 + $0x328] sm:$0xff]  ;;  %v1187_v53 = vld [vmem:[%s1943_s3 + $0x320] sm:$0xff]  ;;  %v1186_v54 = vld [vmem:[%s1943_s3 + $0x318] sm:$0xff] }
  0xf4   :  { %v413_v62 = vpop.f32.mrf.mxu0  ;;  %v1185_v56 = vld [vmem:[%s1943_s3 + $0x310] sm:$0xff] }
  0xf5   :  { %472 = vst.msk [vmem:[#allocation2 + $0x8] sm:$0xff] %vm471_vm2, %v461_v59  ;;  %v1724_v1 = vmax.f32 %v452_v60, 0.0  ;;  %v453_v2 = vadd.f32 %v443_v57, %v433_v61  ;;  %v434_v4 = vadd.f32 %v413_v62, %v277_v58  ;;  %v1184_v60 = vld [vmem:[%s1943_s3 + $0x308] sm:$0xff]  ;;  %v1183_v62 = vld [vmem:[%s1943_s3 + $0x300] sm:$0xff] }
  0xf6   :  { %v415_v6 = vpop.f32.mrf.mxu0 }
  0xf7   :  { %v463_v9 = vmax.f32 %v453_v2, 0.0  ;;  %v454_v10 = vadd.f32 %v444_v63, %v434_v4  ;;  %v435_v11 = vadd.f32 %v415_v6, %v279_v0  ;;  %v584_v44 = vrot.slane %v1724_v1, 1  ;;  %v1182_v63 = vld [vmem:[%s1943_s3 + $0x2f8] sm:$0xff]  ;;  %v1181_v4 = vld [vmem:[%s1943_s3 + $0x2f0] sm:$0xff] }
  0xf8   :  { %v419_v12 = vpop.f32.mrf.mxu0 }
  0xf9   :  { %474 = vst.msk [vmem:[#allocation2 + $0x18] sm:$0xff] %vm471_vm2, %v463_v9  ;;  %v1733_v15 = vmax.f32 %v454_v10, 0.0  ;;  %v455_v16 = vadd.f32 %v445_v7, %v435_v11  ;;  %v436_v17 = vadd.f32 %v419_v12, %v283_v8  ;;  %v1180_v7 = vld [vmem:[%s1943_s3 + $0x2e8] sm:$0xff]  ;;  %v1179_v10 = vld [vmem:[%s1943_s3 + $0x2e0] sm:$0xff] }
  0xfa   :  { %v421_v19 = vpop.f32.mrf.mxu0  ;;  %v531_v32 = vld [vmem:[#allocation2] sm:$0xfe] }
  0xfb   :  { %v465_v22 = vmax.f32 %v455_v16, 0.0  ;;  %v456_v23 = vadd.f32 %v446_v13, %v436_v17  ;;  %v437_v24 = vadd.f32 %v421_v19, %v285_v14  ;;  %v583_v40 = vrot.slane %v531_v32, 1  ;;  %v1178_v13 = vld [vmem:[%s1943_s3 + $0x2d8] sm:$0xff]  ;;  %v1177_v16 = vld [vmem:[%s1943_s3 + $0x2d0] sm:$0xff]  ;;  %v1167_v32 = vld [vmem:[%s1943_s3 + $0x280] sm:$0xff] }
  0xfc   :  { %v425_v25 = vpop.f32.mrf.mxu0  ;;  %v486_v27 = vld [vmem:[#allocation2 + $0x8] sm:$0xff]  ;;  %v589_v50 = vrot.slane %v1733_v15, 1 }
  0xfd   :  { %476 = vst.msk [vmem:[#allocation2 + $0x28] sm:$0xff] %vm471_vm2, %v465_v22  ;;  %v1742_v29 = vmax.f32 %v456_v23, 0.0  ;;  %v457_v30 = vadd.f32 %v447_v20, %v437_v24  ;;  %v438_v31 = vadd.f32 %v425_v25, %v289_v21  ;;  %1154 = vmatprep.mubr.msk.f32.mxu0 %vm471_vm2, %v486_v27  ;;  %v532_v35 = vld [vmem:[#allocation2 + $0x8] sm:$0xfe]  ;;  %v585_v48 = vsel %vm582_vm3, %v583_v40, %v584_v44  ;;  %v1175_v21 = vld [vmem:[%s1943_s3 + $0x2c0] sm:$0xff]  ;;  %v1174_v22 = vld [vmem:[%s1943_s3 + $0x2b8] sm:$0xff] }
  0xfe   :  { %v427_v33 = vpop.f32.mrf.mxu0  ;;  %788 = vmatmul.mubr.f32.vlgmr.msra.gmra.mxu0 %v460_v52  ;;  %v586_v43 = vrot.slane %v532_v35, 1  ;;  %v590_v57 = vsel %vm582_vm3, %v584_v44, %v589_v50  ;;  %v819_v19 = vld [vmem:[#allocation2 + $0x8] sm:$0xfc]  ;;  %v1173_v23 = vld [vmem:[%s1943_s3 + $0x2b0] sm:$0xff]  ;;  %v1171_v27 = vld [vmem:[%s1943_s3 + $0x2a0] sm:$0xff] }
  0xff   :  { %v467_v36 = vmax.f32 %v457_v30, 0.0  ;;  %v458_v37 = vadd.f32 %v448_v26, %v438_v31  ;;  %v439_v39 = vadd.f32 %v427_v33, %v291_v28  ;;  %v593_v59 = vrot.slane %v1742_v29, 1  ;;  %v1172_v25 = vld [vmem:[%s1943_s3 + $0x2a8] sm:$0xff]  ;;  %v1170_v28 = vld [vmem:[%s1943_s3 + $0x298] sm:$0xff]  ;;  %v1169_v30 = vld [vmem:[%s1943_s3 + $0x290] sm:$0xff] }
 0x100   :  { %v1748_v38 = vld [vmem:[#allocation2 + $0x18] sm:$0xff]  ;;  %v867_v24 = vrot.slane %v819_v19, 2  ;;  %v1168_v31 = vld [vmem:[%s1943_s3 + $0x288] sm:$0xff]  ;;  %v1159_v40 = vld [vmem:[%s1943_s3 + $0x240] sm:$0xff] }
 0x101   :  { %478 = vst.msk [vmem:[#allocation2 + $0x38] sm:$0xff] %vm471_vm2, %v467_v36  ;;  %v468_v3 = vmax.f32 %v458_v37, 0.0  ;;  %v459_v41 = vadd.f32 %v449_v34, %v439_v39  ;;  %v587_v42 = vrot.slane %v1748_v38, 1  ;;  %1155 = vmatprep.mubr.msk.f32.mxu0 %vm471_vm2, %v1748_v38  ;;  %v594_v5 = vsel %vm582_vm3, %v589_v50, %v593_v59  ;;  %v1166_v33 = vld [vmem:[%s1943_s3 + $0x278] sm:$0xff]  ;;  %v1165_v34 = vld [vmem:[%s1943_s3 + $0x270] sm:$0xff]  ;;  %v1164_v35 = vld [vmem:[%s1943_s3 + $0x268] sm:$0xff] }
 0x102   :  { %794 = vmatmul.mubr.f32.gmra.mxu0 %v1724_v1  ;;  %v868_v20 = vrot.slane %v1748_v38, 2  ;;  %v1163_v36 = vld [vmem:[%s1943_s3 + $0x260] sm:$0xff]  ;;  %v1162_v37 = vld [vmem:[%s1943_s3 + $0x258] sm:$0xff]  ;;  %v1161_v39 = vld [vmem:[%s1943_s3 + $0x250] sm:$0xff] }
 0x103   :  { %479 = vst [vmem:[#allocation2 + $0x40] sm:$0xf] %v468_v3  ;;  %v469_v45 = vmax.f32 %v459_v41, 0.0  ;;  %v588_v46 = vsel %vm582_vm3, %v586_v43, %v587_v42  ;;  %v1160_v38 = vld [vmem:[%s1943_s3 + $0x248] sm:$0xff]  ;;  %v818_v3 = vld [vmem:[#allocation2] sm:$0xfc] }
 0x104   :  { %1149 = vmatprep.mubr.msk.f32.mxu1 %vm471_vm2, %v588_v46  ;;  %v1762_v49 = vld [vmem:[#allocation2 + $0x28] sm:$0xff]  ;;  %v869_v26 = vsel %vm863_vm5, %v867_v24, %v868_v20  ;;  %v1194_v41 = vld [vmem:[%s1943_s3 + $0x358] sm:$0xff]  ;;  %v864_v44 = vrot.slane %v818_v3, 2  ;;  %v1191_v46 = vld [vmem:[%s1943_s3 + $0x340] sm:$0xff] }
 0x105   :  { %481 = vst.msk [vmem:[#allocation2 + $0x48] sm:$0xf] %vm480_vm4, %v469_v45  ;;  %681 = vmatmul.mubr.f32.vlgmr.msra.gmra.mxu1 %v585_v48  ;;  %v591_v52 = vrot.slane %v1762_v49, 1  ;;  %1156 = vmatprep.mubr.msk.f32.mxu0 %vm471_vm2, %v1762_v49  ;;  %v1192_v43 = vld [vmem:[%s1943_s3 + $0x348] sm:$0xff]  ;;  %v872_v45 = vrot.slane %v1762_v49, 2  ;;  %v870_v48 = vrot.slane %v1733_v15, 2 }
 0x106   :  { %898 = vmatpush1.msra.mxu1 %v1189_v47  ;;  %800 = vmatmul.mubr.f32.gmra.mxu0 %v1733_v15  ;;  %v865_v47 = vrot.slane %v1724_v1, 2 }
 0x107   :  { %899 = vmatprep.subr.mxu1 %v1188_v51  ;;  %v592_v55 = vsel %vm582_vm3, %v587_v42, %v591_v52  ;;  %v1193_v42 = vld [vmem:[%s1943_s3 + $0x350] sm:$0xff] }
 0x108   :  { %900 = vmatpush1.msra.mxu1 %v1187_v53  ;;  %1150 = vmatprep.mubr.msk.f32.mxu1 %vm471_vm2, %v592_v55  ;;  %v1784_v58 = vld [vmem:[#allocation2 + $0x38] sm:$0xff]  ;;  %v866_v50 = vsel %vm863_vm5, %v864_v44, %v865_v47  ;;  %v874_v53 = vrot.slane %v1742_v29, 2 }
 0x109   :  { %901 = vmatprep.subr.mxu1 %v1186_v54  ;;  %687 = vmatmul.mubr.f32.gmra.mxu1 %v590_v57  ;;  %v595_v61 = vrot.slane %v1784_v58, 1  ;;  %v876_v51 = vrot.slane %v1784_v58, 2  ;;  %v871_v54 = vsel %vm863_vm5, %v865_v47, %v870_v48 }
 0x10a   :  { %1157 = vmatprep.mubr.msk.f32.mxu0 %vm471_vm2, %v1784_v58  ;;  %902 = vmatpush1.msra.mxu1 %v1185_v56  ;;  %v533_v0 = vld [vmem:[#allocation2 + $0x40] sm:$0x1f]  ;;  %v875_v56 = vsel %vm863_vm5, %v870_v48, %v874_v53 }
 0x10b   :  { %806 = vmatmul.mubr.f32.gmra.mxu0 %v1742_v29  ;;  %903 = vmatprep.subr.mxu1 %v1184_v60  ;;  %v596_v2 = vsel %vm582_vm3, %v591_v52, %v595_v61  ;;  %v597_v9 = vrot.slane %v533_v0, 1  ;;  %v493_v12 = vld [vmem:[#allocation2 + $0x40] sm:$0xf]  ;;  %v873_v52 = vsel %vm863_vm5, %v868_v20, %v872_v45  ;;  %v877_v1 = vsel %vm863_vm5, %v872_v45, %v876_v51 }
 0x10c   :  { %904 = vmatpush1.msra.mxu1 %v1183_v62  ;;  %1151 = vmatprep.mubr.msk.f32.mxu1 %vm471_vm2, %v596_v2  ;;  %v494_v6 = vld [vmem:[#allocation2 + $0x48] sm:$0xf]  ;;  %v820_v15 = vld [vmem:[#allocation2 + $0x40] sm:$0x3f] }
 0x10d   :  { %v534_v8 = vld [vmem:[#allocation2 + $0x48] sm:$0x1f]  ;;  %905 = vmatprep.subr.mxu1 %v1182_v63  ;;  %693 = vmatmul.mubr.f32.gmra.mxu1 %v594_v5  ;;  %v598_v17 = vsel %vm582_vm3, %v593_v59, %v597_v9  ;;  %v878_v57 = vrot.slane %v820_v15, 2 }
 0x10e   :  { %v599_v11 = vrot.slane %v534_v8, 1  ;;  %1158 = vmatprep.mubr.msk.f32.mxu0 %vm471_vm2, %v494_v6  ;;  %906 = vmatpush1.msra.mxu1 %v1181_v4  ;;  %v821_v49 = vld [vmem:[#allocation2 + $0x48] sm:$0x3f]  ;;  %v1004_v6 = vlaneseq }
 0x10f   :  { %812 = vmatmul.mubr.f32.gmra.mxu0 %v493_v12  ;;  %907 = vmatprep.subr.mxu1 %v1180_v7  ;;  %v880_v55 = vrot.slane %v821_v49, 2  ;;  %v879_v59 = vsel %vm863_vm5, %v874_v53, %v878_v57 }
 0x110   :  { %v600_v14 = vsel %vm582_vm3, %v595_v61, %v599_v11  ;;  %908 = vmatpush1.msra.mxu1 %v1179_v10 }
 0x111   :  { %1152 = vmatprep.mubr.msk.f32.mxu1 %vm471_vm2, %v600_v14  ;;  %909 = vmatprep.subr.mxu1 %v1178_v13  ;;  %v881_v58 = vsel %vm863_vm5, %v876_v51, %v880_v55  ;;  %v1002_v14 = vld [vmem:[%s1945_s4] sm:$0x3] }
 0x112   :  { %699 = vmatmul.mubr.f32.gmra.mxu1 %v598_v17 }
 0x113   :  { %910 = vmatpush1.msra.mxu1 %v1177_v16  ;;  %1153 = vmatprep.mubr.msk.f32.mxu1 %vm471_vm2, %v599_v11 }
 0x114   :  { %911 = vmatprep.subr.mxu1 %v1176_v18 }
 0x115   :  { %912 = vmatpush1.msra.mxu1 %v1175_v21 }
 0x116   :  { %913 = vmatprep.subr.mxu1 %v1174_v22  ;;  %705 = vmatmul.mubr.f32.gmra.mxu1 %v597_v9  ;;  %v1005_v9 = vshrl.u32 %v1004_v6, 7 }
 0x117   :  { %914 = vmatpush1.msra.mxu1 %v1173_v23  ;;  %1195 = vmatprep.mubr.msk.f32.mxu1 %vm471_vm2, %v869_v26 }
 0x118   :  { %915 = vmatprep.subr.mxu1 %v1172_v25  ;;  %v1006_v12 = vsub.s32 0, %v1005_v9  ;;  %v1010_v16 = vsub.s32 1, %v1005_v9 }
 0x119   :  { %916 = vmatpush1.msra.mxu1 %v1171_v27 }
 0x11a   :  { %917 = vmatprep.subr.mxu1 %v1170_v28  ;;  %v1007_v19 = vrot.slane %v1002_v14, %v1006_v12  ;;  %v1011_v24 = vrot.slane %v1002_v14, %v1010_v16 }
 0x11b   :  { %918 = vmatpush1.msra.mxu1 %v1169_v30 }
 0x11c   :  { %919 = vmatprep.subr.mxu1 %v1168_v31 }
 0x11d   :  { %920 = vmatpush1.msra.mxu1 %v1167_v32 }
 0x11e   :  { %921 = vmatprep.subr.mxu1 %v1166_v33 }
 0x11f   :  { %922 = vmatpush1.msra.mxu1 %v1165_v34 }
 0x120   :  { %923 = vmatprep.subr.mxu1 %v1164_v35 }
 0x121   :  { %924 = vmatpush1.msra.mxu1 %v1163_v36 }
 0x122   :  { %925 = vmatprep.subr.mxu1 %v1162_v37 }
 0x123   :  { %926 = vmatpush1.msra.mxu1 %v1161_v39 }
 0x124   :  { %927 = vmatprep.subr.mxu1 %v1160_v38 }
 0x125   :  { %928 = vmatpush1.msra.mxu1 %v1159_v40 }
 0x126   :  { %957 = vmatprep.subr.mxu1 %v1194_v41 }
 0x127   :  { %958 = vmatpush2.msra.mxu1 %v1193_v42 }
 0x128   :  { %959 = vmatprep.subr.mxu1 %v1192_v43 }
 0x129   :  { %960 = vmatpush2.msra.mxu1 %v1191_v46 }
 0x12a   :  { %962 = vmatmul.mubr.f32.vlgmr.msra.gmra.mxu1 %v866_v50 }
 0x12b   :  { %1196 = vmatprep.mubr.msk.f32.mxu1 %vm471_vm2, %v873_v52 }
 0x12e   :  { %968 = vmatmul.mubr.f32.gmra.mxu1 %v871_v54 }
 0x12f   :  { %1197 = vmatprep.mubr.msk.f32.mxu1 %vm471_vm2, %v877_v1 }
 0x132   :  { %974 = vmatmul.mubr.f32.gmra.mxu1 %v875_v56 }
 0x133   :  { %1198 = vmatprep.mubr.msk.f32.mxu1 %vm471_vm2, %v881_v58 }
 0x136   :  { %980 = vmatmul.mubr.f32.gmra.mxu1 %v879_v59 }
 0x137   :  { %1199 = vmatprep.mubr.msk.f32.mxu1 %vm471_vm2, %v880_v55 }
 0x13a   :  { %986 = vmatmul.mubr.f32.gmra.mxu1 %v878_v57 }
 0x1be   :  { %v789_v0 = vpop.f32.mrf.mxu0 }
 0x1c0   :  { %v791_v4 = vpop.f32.mrf.mxu0 }
 0x1c2   :  { %v795_v7 = vpop.f32.mrf.mxu0 }
 0x1c4   :  { %v797_v10 = vpop.f32.mrf.mxu0 }
 0x1c5   :  { %v682_v29 = vpop.f32.mrf.mxu1 }
 0x1c6   :  { %v801_v13 = vpop.f32.mrf.mxu0  ;;  %v790_v18 = vadd.f32 %v789_v0, %v682_v29 }
 0x1c7   :  { %v684_v60 = vpop.f32.mrf.mxu1 }
 0x1c8   :  { %v803_v20 = vpop.f32.mrf.mxu0  ;;  %v792_v22 = vadd.f32 %v791_v4, %v684_v60 }
 0x1c9   :  { %v688_v61 = vpop.f32.mrf.mxu1 }
 0x1ca   :  { %v796_v26 = vadd.f32 %v795_v7, %v688_v61 }
 0x1cb   :  { %v690_v62 = vpop.f32.mrf.mxu1  ;;  %v807_v30 = vpop.f32.mrf.mxu0 }
 0x1cc   :  { %v798_v32 = vadd.f32 %v797_v10, %v690_v62 }
 0x1cd   :  { %v694_v63 = vpop.f32.mrf.mxu1  ;;  %v809_v3 = vpop.f32.mrf.mxu0 }
 0x1ce   :  { %v802_v37 = vadd.f32 %v801_v13, %v694_v63 }
 0x1cf   :  { %v696_v2 = vpop.f32.mrf.mxu1  ;;  %v813_v52 = vpop.f32.mrf.mxu0 }
 0x1d0   :  { %v804_v42 = vadd.f32 %v803_v20, %v696_v2 }
 0x1d1   :  { %v815_v29 = vpop.f32.mrf.mxu0 }
 0x1d2   :  { %v700_v5 = vpop.f32.mrf.mxu1 }
 0x1d3   :  { %v808_v47 = vadd.f32 %v807_v30, %v700_v5 }
 0x1d4   :  { %v702_v8 = vpop.f32.mrf.mxu1 }
 0x1d5   :  { %v810_v53 = vadd.f32 %v809_v3, %v702_v8 }
 0x1d6   :  { %v706_v11 = vpop.f32.mrf.mxu1 }
 0x1d7   :  { %v814_v56 = vadd.f32 %v813_v52, %v706_v11 }
 0x1d8   :  { %v708_v17 = vpop.f32.mrf.mxu1 }
 0x1d9   :  { %v816_v61 = vadd.f32 %v815_v29, %v708_v17 }
 0x1ea   :  { %v963_v21 = vpop.f32.mrf.mxu1 }
 0x1eb   :  { %v992_v23 = vadd.f32 %v963_v21, %v790_v18 }
 0x1ec   :  { %v965_v25 = vpop.f32.mrf.mxu1 }
 0x1ed   :  { %v1014_v27 = vadd.f32 %v1007_v19, %v992_v23  ;;  %v993_v28 = vadd.f32 %v965_v25, %v792_v22 }
 0x1ee   :  { %v969_v31 = vpop.f32.mrf.mxu1 }
 0x1ef   :  { %v1024_v33 = vmax.f32 %v1014_v27, 0.0  ;;  %v1015_v34 = vadd.f32 %v1011_v24, %v993_v28  ;;  %v994_v35 = vadd.f32 %v969_v31, %v796_v26 }
 0x1f0   :  { %v971_v36 = vpop.f32.mrf.mxu1 }
 0x1f1   :  { %1034 = vst [vmem:[%s1946_s5] sm:$0xff] %v1024_v33  ;;  %v1025_v39 = vmax.f32 %v1015_v34, 0.0  ;;  %v1016_v38 = vadd.f32 %v1007_v19, %v994_v35  ;;  %v995_v40 = vadd.f32 %v971_v36, %v798_v32 }
 0x1f2   :  { %v975_v41 = vpop.f32.mrf.mxu1 }
 0x1f3   :  { %1035 = vst [vmem:[%s1946_s5 + $0x8] sm:$0xff] %v1025_v39  ;;  %v1026_v43 = vmax.f32 %v1016_v38, 0.0  ;;  %v1017_v44 = vadd.f32 %v1011_v24, %v995_v40  ;;  %v996_v45 = vadd.f32 %v975_v41, %v802_v37 }
 0x1f4   :  { %v977_v46 = vpop.f32.mrf.mxu1 }
 0x1f5   :  { %1036 = vst [vmem:[%s1946_s5 + $0x10] sm:$0xff] %v1026_v43  ;;  %v1027_v48 = vmax.f32 %v1017_v44, 0.0  ;;  %v1018_v50 = vadd.f32 %v1007_v19, %v996_v45  ;;  %v997_v51 = vadd.f32 %v977_v46, %v804_v42 }
 0x1f6   :  { %v981_v49 = vpop.f32.mrf.mxu1 }
 0x1f7   :  { %1037 = vst [vmem:[%s1946_s5 + $0x18] sm:$0xff] %v1027_v48  ;;  %v1028_v54 = vmax.f32 %v1018_v50, 0.0  ;;  %v1019_v1 = vadd.f32 %v1011_v24, %v997_v51  ;;  %v998_v55 = vadd.f32 %v981_v49, %v808_v47 }
 0x1f8   :  { %v983_v15 = vpop.f32.mrf.mxu1 }
 0x1f9   :  { %1038 = vst [vmem:[%s1946_s5 + $0x20] sm:$0xff] %v1028_v54  ;;  %v1029_v57 = vmax.f32 %v1019_v1, 0.0  ;;  %v1020_v58 = vadd.f32 %v1007_v19, %v998_v55  ;;  %v999_v59 = vadd.f32 %v983_v15, %v810_v53 }
 0x1fa   :  { %v987_v60 = vpop.f32.mrf.mxu1 }
 0x1fb   :  { %1039 = vst [vmem:[%s1946_s5 + $0x28] sm:$0xff] %v1029_v57  ;;  %v1030_v62 = vmax.f32 %v1020_v58, 0.0  ;;  %v1021_v63 = vadd.f32 %v1011_v24, %v999_v59  ;;  %v1000_v0 = vadd.f32 %v987_v60, %v814_v56 }
 0x1fc   :  { %v989_v2 = vpop.f32.mrf.mxu1 }
 0x1fd   :  { %1040 = vst [vmem:[%s1946_s5 + $0x30] sm:$0xff] %v1030_v62  ;;  %v1031_v4 = vmax.f32 %v1021_v63, 0.0  ;;  %v1022_v5 = vadd.f32 %v1007_v19, %v1000_v0  ;;  %v1001_v6 = vadd.f32 %v989_v2, %v816_v61 }
 0x1ff   :  { %1041 = vst [vmem:[%s1946_s5 + $0x38] sm:$0xff] %v1031_v4  ;;  %v1032_v7 = vmax.f32 %v1022_v5, 0.0  ;;  %v1023_v8 = vadd.f32 %v1011_v24, %v1001_v6 }
 0x201   :  { %1042 = vst [vmem:[%s1946_s5 + $0x40] sm:$0xf] %v1032_v7  ;;  %v1033_v9 = vmax.f32 %v1023_v8, 0.0 }
 0x203   :  { %1043 = vst [vmem:[%s1946_s5 + $0x48] sm:$0xf] %v1033_v9 }

</bundles_post_ra>
